<compile_context>
chip_gen: v7x
topology: tpu7x:2x2x1
jax: 0.10.0
libtpu: 0.0.40
codegen_flags: <defaults>
</compile_context>

<pallas_src>
import functools

import jax
import jax.numpy as jnp
from jax.experimental import pallas as pl
from jax.experimental.pallas import tpu as pltpu


_NUM_CORES = 2     # leading "parallel" grid axis -> both TCs on v7x
_SUBLANES = 8
_LANES = 128
_MAX_TILE_N = 512  # rows per tile (multiple of 8); keeps VMEM bounded per step


def _make_target_kernel(output_type, conf, n_rows, tile_n, box_cols, padded_rows):
    """Builds the fused max / threshold / masked-sum kernel."""
    want_class = output_type in ("class", "all")
    want_box = output_type in ("box", "all")
    need_row_mask = padded_rows > n_rows  # padded / duplicated tiles exist

    def kernel(post_ref, box_ref, o_ref, acc_ref):
        c = pl.program_id(0)              # core-split axis ("parallel")
        i = pl.program_id(1)              # row-tile axis  ("arbitrary")
        n_inner = pl.num_programs(1)

        @pl.when(i == 0)
        def _init():
            acc_ref[...] = jnp.zeros_like(acc_ref)

        post = post_ref[...]                                          # [tile_n, C]
        row_max = jnp.max(post, axis=-1, keepdims=True).astype(jnp.float32)

        keep = row_max >= jnp.float32(conf)                           # [tile_n, 1]
        if need_row_mask:
            row_start = (c * n_inner + i) * tile_n
            row_ids = row_start + jax.lax.broadcasted_iota(
                jnp.int32, (tile_n, 1), 0)
            keep = jnp.logical_and(keep, row_ids < n_rows)

        if want_box:
            boxes = box_ref[...]                                      # [tile_n, Cb]
            if box_cols > 4:
                lane = jax.lax.broadcasted_iota(jnp.int32, boxes.shape, 1)
                boxes = jnp.where(lane < 4, boxes, jnp.zeros_like(boxes))
            box_rowsum = jnp.sum(
                boxes, axis=-1, keepdims=True).astype(jnp.float32)    # [tile_n, 1]

        # Fused per-row contribution (static selection on output_type).
        if want_class and want_box:
            per_row = row_max + box_rowsum
        elif want_class:
            per_row = row_max
        elif want_box:
            per_row = box_rowsum
        else:
            per_row = jnp.zeros_like(row_max)

        contrib = jnp.where(keep, per_row, 0.0)                       # [tile_n, 1]
        acc_ref[...] += jnp.sum(contrib, axis=0, keepdims=True)       # (1, 1)

        @pl.when(i == n_inner - 1)
        def _finalize():
            # Per-core partial sum, replicated over its (8,128) output block
            # (lane-dense, unmasked store).
            o_ref[...] = jnp.broadcast_to(acc_ref[...], o_ref.shape)

    return kernel


@functools.partial(jax.jit, static_argnames=("output_type", "conf"))
def yolov8_target_pallas(post_result, pre_post_boxes, *, output_type: str, conf: float):
    """post_result: [N, C]; pre_post_boxes: [N, >=4] -> scalar f32."""
    n, num_classes = post_result.shape
    box_cols = pre_post_boxes.shape[1]

    # Row tile: multiple of 8, capped for bounded, generation-portable VMEM.
    tile_n = max(_SUBLANES,
                 min(_MAX_TILE_N, ((n + _SUBLANES - 1) // _SUBLANES) * _SUBLANES))
    n_row_blocks = pl.cdiv(n, tile_n)
    tiles_per_core = pl.cdiv(n_row_blocks, _NUM_CORES)
    padded_rows = _NUM_CORES * tiles_per_core * tile_n

    def row_block(c, i):
        # Clamp fully out-of-range tiles back in bounds; their rows are masked
        # off in-kernel via the logical row-index predicate.
        return jnp.minimum(c * tiles_per_core + i, n_row_blocks - 1)

    kernel = _make_target_kernel(
        output_type, conf, n, tile_n, box_cols, padded_rows)

    partials = pl.pallas_call(
        kernel,
        out_shape=jax.ShapeDtypeStruct((_NUM_CORES * _SUBLANES, _LANES), jnp.float32),
        grid=(_NUM_CORES, tiles_per_core),
        in_specs=[
            pl.BlockSpec((tile_n, num_classes), lambda c, i: (row_block(c, i), 0)),
            pl.BlockSpec((tile_n, box_cols), lambda c, i: (row_block(c, i), 0)),
        ],
        out_specs=pl.BlockSpec((_SUBLANES, _LANES), lambda c, i: (c, 0)),
        scratch_shapes=[pltpu.VMEM((1, 1), jnp.float32)],
        compiler_params=pltpu.CompilerParams(
            dimension_semantics=("parallel", "arbitrary"),
        ),
    )(post_result, pre_post_boxes)

    # One representative element per core's replicated partial-sum block.
    return jnp.sum(partials[::_SUBLANES, 0])


def _reference(post_result, pre_post_boxes, output_type, conf):
    """Pure-JAX replica of the PyTorch forward for sanity checking."""
    row_max = jnp.max(post_result, axis=-1)
    keep = row_max >= conf
    total = jnp.zeros((), jnp.float32)
    if output_type in ("class", "all"):
        total = total + jnp.sum(jnp.where(keep, row_max, 0.0))
    if output_type in ("box", "all"):
        total = total + jnp.sum(jnp.where(keep[:, None], pre_post_boxes[:, :4], 0.0))
    return total


if __name__ == "__main__":
    key = jax.random.PRNGKey(0)
    k1, k2 = jax.random.split(key)

    N, C = 8, 16   # 8 candidate detections, 16 classes
    post_result = jax.random.uniform(k1, (N, C), dtype=jnp.float32)            # scores
    pre_post_boxes = jax.random.uniform(k2, (N, 4), dtype=jnp.float32) * 16.0  # boxes

    output_type = "all"
    conf = 0.5   # some rows pass, some don't
    # ratio is unused in forward, kept for interface parity.

    out = yolov8_target_pallas(
        post_result, pre_post_boxes, output_type=output_type, conf=conf
    )
    out = jax.block_until_ready(out)

    ref = _reference(post_result, pre_post_boxes, output_type, conf)
    assert jnp.allclose(out, ref, rtol=1e-5, atol=1e-5), (out, ref)

    print("KERNEL_OK")
</pallas_src>

<mosaic_0001>
module attributes {stable_mosaic.version = 11 : i64} {
  func.func @kernel(%arg0: i32, %arg1: i32, %arg2: memref<8x16xf32, #tpu.memory_space<vmem>>, %arg3: memref<8x4xf32, #tpu.memory_space<vmem>>, %arg4: memref<8x128xf32, #tpu.memory_space<vmem>>, %arg5: memref<1x1xf32, #tpu.memory_space<vmem>>) attributes {dimension_semantics = [#tpu.dimension_semantics<parallel>, #tpu.dimension_semantics<arbitrary>], iteration_bounds = array<i64: 2, 1>, scalar_prefetch = 0 : i64, scratch_operands = 1 : i64, tpu.core_type = #tpu.core_type<tc>, window_params = [{transform_indices = @transform_0, window_bounds = array<i64: 8, 16>}, {transform_indices = @transform_1, window_bounds = array<i64: 8, 4>}, {transform_indices = @transform_2, window_bounds = array<i64: 8, 128>}]} {
    %c0_i32 = arith.constant 0 : i32
    %0 = arith.cmpi eq, %arg1, %c0_i32 : i32
    %1 = arith.extui %0 : i1 to i32
    %c0_i32_0 = arith.constant 0 : i32
    %2 = arith.cmpi ne, %1, %c0_i32_0 : i32
    scf.if %2 {
      %cst_15 = arith.constant 0.000000e+00 : f32
      %31 = vector.broadcast %cst_15 : f32 to vector<1x1xf32>
      %c0_16 = arith.constant 0 : index
      %c0_17 = arith.constant 0 : index
      %32 = vector.load %arg5[%c0_16, %c0_17] : memref<1x1xf32, #tpu.memory_space<vmem>>, vector<1x1xf32>
      tpu.vector_store %arg5[%c0_16, %c0_17], %31 {strides = array<i32>} : memref<1x1xf32, #tpu.memory_space<vmem>>, vector<1x1xf32>,
    } else {
    }
    %c0 = arith.constant 0 : index
    %c0_1 = arith.constant 0 : index
    %3 = vector.load %arg2[%c0, %c0_1] : memref<8x16xf32, #tpu.memory_space<vmem>>, vector<8x16xf32>
    %cst = arith.constant dense<0xFF800000> : vector<8xf32>
    %4 = vector.multi_reduction <maximumf>, %3, %cst [1] : vector<8x16xf32> to vector<8xf32>
    %5 = vector.shape_cast %4 : vector<8xf32> to vector<8x1xf32>
    %cst_2 = arith.constant 5.000000e-01 : f32
    %6 = vector.broadcast %cst_2 : f32 to vector<8x1xf32>
    %7 = arith.cmpf oge, %5, %6 : vector<8x1xf32>
    %c1_i32 = arith.constant 1 : i32
    %8 = arith.muli %arg0, %c1_i32 : i32
    %9 = arith.addi %8, %arg1 : i32
    %c8_i32 = arith.constant 8 : i32
    %10 = arith.muli %9, %c8_i32 : i32
    %11 = tpu.iota {dimensions = array<i32: 0>} : vector<8x1xi32>
    %12 = vector.broadcast %10 : i32 to vector<8x1xi32>
    %13 = arith.addi %12, %11 : vector<8x1xi32>
    %c8_i32_3 = arith.constant 8 : i32
    %14 = vector.broadcast %c8_i32_3 : i32 to vector<8x1xi32>
    %15 = arith.cmpi slt, %13, %14 : vector<8x1xi32>
    %16 = arith.andi %7, %15 : vector<8x1xi1>
    %c0_4 = arith.constant 0 : index
    %c0_5 = arith.constant 0 : index
    %17 = vector.load %arg3[%c0_4, %c0_5] : memref<8x4xf32, #tpu.memory_space<vmem>>, vector<8x4xf32>
    %cst_6 = arith.constant dense<0.000000e+00> : vector<8xf32>
    %18 = vector.multi_reduction <add>, %17, %cst_6 [1] : vector<8x4xf32> to vector<8xf32>
    %19 = vector.shape_cast %18 : vector<8xf32> to vector<8x1xf32>
    %20 = arith.addf %5, %19 : vector<8x1xf32>
    %cst_7 = arith.constant 0.000000e+00 : f32
    %21 = vector.broadcast %cst_7 : f32 to vector<8x1xf32>
    %22 = arith.select %16, %20, %21 : vector<8x1xi1>, vector<8x1xf32>
    %c0_8 = arith.constant 0 : index
    %c0_9 = arith.constant 0 : index
    %23 = vector.load %arg5[%c0_8, %c0_9] : memref<1x1xf32, #tpu.memory_space<vmem>>, vector<1x1xf32>
    %cst_10 = arith.constant dense<0.000000e+00> : vector<1xf32>
    %24 = vector.multi_reduction <add>, %22, %cst_10 [0] : vector<8x1xf32> to vector<1xf32>
    %25 = vector.shape_cast %24 : vector<1xf32> to vector<1x1xf32>
    %26 = arith.addf %23, %25 : vector<1x1xf32>
    %c0_11 = arith.constant 0 : index
    %c0_12 = arith.constant 0 : index
    %27 = vector.load %arg5[%c0_11, %c0_12] : memref<1x1xf32, #tpu.memory_space<vmem>>, vector<1x1xf32>
    tpu.vector_store %arg5[%c0_11, %c0_12], %26 {strides = array<i32>} : memref<1x1xf32, #tpu.memory_space<vmem>>, vector<1x1xf32>,
    %c0_i32_13 = arith.constant 0 : i32
    %28 = arith.cmpi eq, %arg1, %c0_i32_13 : i32
    %29 = arith.extui %28 : i1 to i32
    %c0_i32_14 = arith.constant 0 : i32
    %30 = arith.cmpi ne, %29, %c0_i32_14 : i32
    scf.if %30 {
      %c0_15 = arith.constant 0 : index
      %c0_16 = arith.constant 0 : index
      %31 = vector.load %arg5[%c0_15, %c0_16] : memref<1x1xf32, #tpu.memory_space<vmem>>, vector<1x1xf32>
      %32 = vector.shape_cast %31 : vector<1x1xf32> to vector<1x1xf32>
      %33 = vector.broadcast %32 : vector<1x1xf32> to vector<8x128xf32>
      %c0_17 = arith.constant 0 : index
      %c0_18 = arith.constant 0 : index
      %34 = vector.load %arg4[%c0_17, %c0_18] : memref<8x128xf32, #tpu.memory_space<vmem>>, vector<8x128xf32>
      tpu.vector_store %arg4[%c0_17, %c0_18], %33 {strides = array<i32>} : memref<8x128xf32, #tpu.memory_space<vmem>>, vector<8x128xf32>,
    } else {
    }
    return
  }
  func.func @transform_0(%arg0: i32, %arg1: i32) -> (i32, i32) {
    %c1_i32 = arith.constant 1 : i32
    %0 = arith.muli %arg0, %c1_i32 : i32
    %1 = arith.addi %0, %arg1 : i32
    %c0_i32 = arith.constant 0 : i32
    %2 = arith.minsi %1, %c0_i32 : i32
    %c0_i32_0 = arith.constant 0 : i32
    %c0_i32_1 = arith.constant 0 : i32
    return %2, %c0_i32_0 : i32, i32
  }
  func.func @transform_1(%arg0: i32, %arg1: i32) -> (i32, i32) {
    %c1_i32 = arith.constant 1 : i32
    %0 = arith.muli %arg0, %c1_i32 : i32
    %1 = arith.addi %0, %arg1 : i32
    %c0_i32 = arith.constant 0 : i32
    %2 = arith.minsi %1, %c0_i32 : i32
    %c0_i32_0 = arith.constant 0 : i32
    %c0_i32_1 = arith.constant 0 : i32
    return %2, %c0_i32_0 : i32, i32
  }
  func.func @transform_2(%arg0: i32, %arg1: i32) -> (i32, i32) {
    %c0_i32 = arith.constant 0 : i32
    %c0_i32_0 = arith.constant 0 : i32
    return %arg0, %c0_i32 : i32, i32
  }
}

</mosaic_0001>

<bundles_post_ra>
// kernel: yolov8_target_pallas.1
= control target key start
LH: loop header
LB: loop body
LE: loop exit
PB: predicated region body
PF: predicated region fallthrough
CT: control target
= control target key end

     0   :  { %s421_s9 = smov 0   ;;  %s423_s10 = smov 0   ;;  %s466_s0 = inlined_call_operand.vmem [shape: f32[8,16], index: 0, kind: input, shape index: {}]   ;;  %s467_s1 = inlined_call_operand.vmem [shape: f32[8,4], index: 1, kind: input, shape index: {}]   ;;  %s468_s2 = inlined_call_operand.vmem [shape: f32[16,128], index: 2, kind: output, shape index: {}]  }
   0x1   :  { %s425_s11 = smov 0  }
   0x2 LB: > { %s24_s12 = sadd.s32 1, %s398_s10  ;;  %p338_p0 = scmp.ge.s32.totalorder %s402_s11, 1  ;;  %s402_s11 = sphi %s425_s11, %s12_s11   ;;  %s398_s10 = sphi %s423_s10, %s470_s10   ;;  %s394_s9 = sphi %s421_s9, %s469_s9  }
   0x3   : > { %p26_p1 = scmp.ge.s32.totalorder %s24_s12, 2  ;;  %p156_p2 = scmp.lt.s32.totalorder %s402_s11, 3 }
   0x5   : > { %s472_s12 = smov (%p26_p1, %s24_s12), 0  ;;  %p157_p3 = pnand %p338_p0, %p156_p2 }
   0x6   : > { %p187_p4 = scmp.lt.s32.totalorder (!%p157_p3), %s394_s9, 0  ;;  %vm217_vm0 = vcmask (!%p157_p3), 130048   ;;  %vm231_vm1 = vcmask (!%p157_p3), 31744   ;;  %vm214_vm2 = vcmask (!%p157_p3), 0   ;;  %v404_v4 = vmov (!%p157_p3), 0.0   ;;  %s348_s21 = sshll.u32 (!%p157_p3), %s394_s9, 3 }
   0x7   : > { %160 = sbr.rel (%p157_p3) target bundleno = 321 (0x141), region = 28  ;;  %215 = vst.msk [vmem:[#allocation2] sm:$0x1] (!%p157_p3), %vm214_vm2, %v404_v4  ;;  %v405_v5 = vmov (!%p157_p3), 0   ;;  %v224_v6 = vlaneseq (!%p157_p3)  ;;  %v226_v8 = vstv (!%p157_p3), %s348_s21  ;;  %p206_p5 = scmp.lt.s32.totalorder (!%p157_p3), %s394_s9, 1 }
   0x8   : > { %378 = vset.pattern.permute.xlu1 (!%p157_p3), %v405_v5  ;;  %379 = vset.pattern.permute.xlu0 (!%p157_p3), %v405_v5 }
   0x9   : > { %v225_v7 = vshrl.u32 (!%p157_p3), %v224_v6, 7 }
   0xb   : > { %v227_v9 = vadd.s32 (!%p157_p3), %v226_v8, %v225_v7 }
   0xd   : > { %vm228_vm3 = vcmp.lt.s32.totalorder (!%p157_p3), %v227_v9, 8 }
   0xe   : > { %s188_s13 = scalar_select %p187_p4, %s394_s9, 0  ;;  %v237_v19 = vld [vmem:[#allocation2] sm:$0x1] }
   0xf   : > { %s476_s9 = smov (!%p206_p5, %s394_s9), 1 }
  0x10   : > { %s474_s13 = smov (!%p187_p4, %s188_s13), 0  ;;  %s347_s22 = sshll.u32 %s476_s9, 3 }
  0x11   : > { %s342_s14 = sshll.u32 %s474_s13, 3  ;;  %s209_s25 = scalar_lea.vmem %s468_s2, %s347_s22 }
  0x12   : > { %s192_s17 = scalar_lea.vmem %s466_s0, %s342_s14  ;;  %s202_s20 = scalar_lea.vmem %s467_s1, %s342_s14 }
  0x13   : > { %v216_v0 = vld [vmem:[%s192_s17] sm:$0xff] }
  0x14   : > { %v230_v1 = vld [vmem:[%s202_s20] sm:$0xff]  ;;  %v218_v2 = vsel %vm217_vm0, %v216_v0, -inf }
  0x15   : > { %219 = vmax.xlane.f32.xlu0 %v218_v2  ;;  %v232_v3 = vsel %vm231_vm1, %v230_v1, 0.0 }
  0x19   : > { %233 = vadd.xlane.f32.xlu0 %v232_v3 }
  0xa2   : > { %v220_v10 = vpop.xlane.xlu0 %219 }
  0xa3   : > { %vm221_vm4 = vcmp.ge.f32.partialorder %v220_v10, 0.5 }
  0xa4   : > { %vm229_vm5 = vmand %vm221_vm4, %vm228_vm3 }
  0xa6   : > { %v234_v11 = vpop.xlane.xlu0 %233 }
  0xa7   : > { %v235_v12 = vadd.f32 %v234_v11, %v220_v10 }
  0xa9   : > { %v236_v13 = vsel %vm229_vm5, %v235_v12, 0.0 }
  0xaa   : > { %v238_v14 = vrot.slane %v236_v13, 4 }
  0xac   : > { %v239_v15 = vadd.f32 %v238_v14, %v236_v13 }
  0xae   : > { %v240_v16 = vrot.slane %v239_v15, 2 }
  0xb0   : > { %v241_v17 = vadd.f32 %v240_v16, %v239_v15 }
  0xb2   : > { %v242_v18 = vrot.slane %v241_v17, 1 }
  0xb4   : > { %v243_v20 = vadd.f32 %v242_v18, %v241_v17 }
  0xb6   : > { %v244_v21 = vadd.f32 %v243_v20, %v237_v19 }
  0xb8   : > { %246 = vst.msk [vmem:[#allocation2] sm:$0x1] %vm214_vm2, %v244_v21 }
  0xbf   : > { %v349_v22 = vld [vmem:[#allocation2] ss:$0 sm:$0xff] }
  0xc0   : > { %257 = vperm.xlu1 %378, %v349_v22  }
 0x13f   : > { %v258_v23 = vpop.permute.xlu1 %257 }
 0x140   : > { %260 = vst [vmem:[%s209_s25] sm:$0xff] %v258_v23 }
 0x141 PF: > { %s12_s11 = sadd.s32 1, %s402_s11   ;;  %s469_s9 = smov %s398_s10 }
 0x142   : > { %p9_p6 = scmp.ge.s32.totalorder %s12_s11, 4   ;;  %s470_s10 = smov %s472_s12 }
 0x144   :  { %11 = sbr.rel (!%p9_p6) target bundleno = 2 (0x2), region = 69 }

</bundles_post_ra>
